<compile_context>
chip_gen: v7x
topology: tpu7x:2x2x1
jax: 0.10.0
libtpu: 0.0.40
codegen_flags: <defaults>
</compile_context>

<pallas_src>
import jax
import jax.numpy as jnp
from jax.experimental import pallas as pl
from jax.experimental.pallas import tpu as pltpu

LANES = 128        # lane width of a vreg; feature planes are (M, 128)
MAX_TILE_M = 2048  # rows of the (M, 128) layout per grid step (1 MiB/plane f32)


def _linear_logistic_kernel(params_ref, x_ref, o_ref):
    # params_ref: SMEM (3,) -> a, b, c scalars (read once per grid step)
    # x_ref:      VMEM (2, tile_m, 128)  -- x[...,0] plane and x[...,1] plane
    # o_ref:      VMEM (tile_m, 128)
    a = params_ref[0]
    b = params_ref[1]
    c = params_ref[2]
    z = a * x_ref[0] + b * x_ref[1] + c   # VPU FMAs on full vregs
    o_ref[...] = jax.nn.sigmoid(z)        # exp/recip on the EUP slot


def linear_logistic_forward(params, input_x):
    """params: (3,) f32 holding [a, b, c]; input_x: (N, 2) f32 -> (N, 1) f32."""
    n = input_x.shape[0]
    m = pl.cdiv(n, LANES)                  # rows of the lane-dense (M, 128) layout
    tile_m = min(MAX_TILE_M, m)            # small inputs: one full-array block
    m_pad = pl.cdiv(m, tile_m) * tile_m    # make the grid exact
    n_pad = m_pad * LANES

    # Pad once, then deinterleave the two features into lane-dense planes:
    # (n_pad, 2) -> (2, n_pad) -> (2, m_pad, 128).
    x = jnp.pad(input_x, ((0, n_pad - n), (0, 0))).T.reshape(2, m_pad, LANES)

    out = pl.pallas_call(
        _linear_logistic_kernel,
        out_shape=jax.ShapeDtypeStruct((m_pad, LANES), jnp.float32),
        grid=(m_pad // tile_m,),
        in_specs=[
            pl.BlockSpec(memory_space=pltpu.SMEM),               # a, b, c scalars
            pl.BlockSpec((2, tile_m, LANES), lambda i: (0, i, 0)),  # feature planes
        ],
        out_specs=pl.BlockSpec((tile_m, LANES), lambda i: (i, 0)),
        compiler_params=pltpu.CompilerParams(
            dimension_semantics=("parallel",),
        ),
    )(params, x)

    # Back to the module's (N, 1) contract, trimming the padded rows.
    return out.reshape(-1, 1)[:n]


if __name__ == "__main__":
    key = jax.random.PRNGKey(0)
    k_params, k_x = jax.random.split(key)

    # a, b, c are each torch.randn(1) scalars in the PyTorch module.
    params = jax.random.normal(k_params, (3,), dtype=jnp.float32)

    # Two small batches: one tiny (< 128, exercises the full-array-block path)
    # and one non-multiple of 128 (exercises padding + trim).
    for batch in (8, 300):
        kx = jax.random.fold_in(k_x, batch)
        input_x = jax.random.normal(kx, (batch, 2), dtype=jnp.float32)

        out = jax.block_until_ready(linear_logistic_forward(params, input_x))

        ref = jax.nn.sigmoid(
            params[0] * input_x[:, 0] + params[1] * input_x[:, 1] + params[2]
        ).reshape(-1, 1)
        assert out.shape == (batch, 1)
        assert jnp.allclose(out, ref, atol=1e-6), "mismatch vs reference"

    print("KERNEL_OK")
</pallas_src>

<mosaic_0001>
module attributes {stable_mosaic.version = 11 : i64} {
  func.func @_linear_logistic_kernel(%arg0: i32, %arg1: memref<3xf32, #tpu.memory_space<smem>>, %arg2: memref<2x1x128xf32, #tpu.memory_space<vmem>>, %arg3: memref<1x128xf32, #tpu.memory_space<vmem>>) attributes {dimension_semantics = [#tpu.dimension_semantics<parallel>], iteration_bounds = array<i64: 1>, scalar_prefetch = 0 : i64, scratch_operands = 0 : i64, tpu.core_type = #tpu.core_type<tc>, window_params = [{transform_indices = @transform_0, window_bounds = array<i64: 3>}, {transform_indices = @transform_1, window_bounds = array<i64: 2, 1, 128>}, {transform_indices = @transform_2, window_bounds = array<i64: 1, 128>}]} {
    %c0 = arith.constant 0 : index
    %0 = memref.load %arg1[%c0] : memref<3xf32, #tpu.memory_space<smem>>
    %c1 = arith.constant 1 : index
    %1 = memref.load %arg1[%c1] : memref<3xf32, #tpu.memory_space<smem>>
    %c2 = arith.constant 2 : index
    %2 = memref.load %arg1[%c2] : memref<3xf32, #tpu.memory_space<smem>>
    %c0_0 = arith.constant 0 : index
    %c0_1 = arith.constant 0 : index
    %c0_2 = arith.constant 0 : index
    %3 = vector.load %arg2[%c0_0, %c0_1, %c0_2] : memref<2x1x128xf32, #tpu.memory_space<vmem>>, vector<1x1x128xf32>
    %4 = vector.shape_cast %3 : vector<1x1x128xf32> to vector<1x128xf32>
    %5 = vector.broadcast %0 : f32 to vector<1x128xf32>
    %6 = arith.mulf %5, %4 : vector<1x128xf32>
    %c1_3 = arith.constant 1 : index
    %c0_4 = arith.constant 0 : index
    %c0_5 = arith.constant 0 : index
    %7 = vector.load %arg2[%c1_3, %c0_4, %c0_5] : memref<2x1x128xf32, #tpu.memory_space<vmem>>, vector<1x1x128xf32>
    %8 = vector.shape_cast %7 : vector<1x1x128xf32> to vector<1x128xf32>
    %9 = vector.broadcast %1 : f32 to vector<1x128xf32>
    %10 = arith.mulf %9, %8 : vector<1x128xf32>
    %11 = arith.addf %6, %10 : vector<1x128xf32>
    %12 = vector.broadcast %2 : f32 to vector<1x128xf32>
    %13 = arith.addf %11, %12 : vector<1x128xf32>
    %14 = arith.negf %13 : vector<1x128xf32>
    %15 = math.exp %14 : vector<1x128xf32>
    %cst = arith.constant 1.000000e+00 : f32
    %16 = vector.broadcast %cst : f32 to vector<1x128xf32>
    %17 = arith.addf %16, %15 : vector<1x128xf32>
    %18 = arith.divf %16, %17 : vector<1x128xf32>
    %c0_6 = arith.constant 0 : index
    %c0_7 = arith.constant 0 : index
    %19 = vector.load %arg3[%c0_6, %c0_7] : memref<1x128xf32, #tpu.memory_space<vmem>>, vector<1x128xf32>
    tpu.vector_store %arg3[%c0_6, %c0_7], %18 {strides = array<i32>} : memref<1x128xf32, #tpu.memory_space<vmem>>, vector<1x128xf32>,
    return
  }
  func.func @transform_0(%arg0: i32) -> i32 {
    %c0_i32 = arith.constant 0 : i32
    %c0_i32_0 = arith.constant 0 : i32
    return %c0_i32 : i32
  }
  func.func @transform_1(%arg0: i32) -> (i32, i32, i32) {
    %c0_i32 = arith.constant 0 : i32
    %c0_i32_0 = arith.constant 0 : i32
    %c0_i32_1 = arith.constant 0 : i32
    return %c0_i32, %arg0, %c0_i32_0 : i32, i32, i32
  }
  func.func @transform_2(%arg0: i32) -> (i32, i32) {
    %c0_i32 = arith.constant 0 : i32
    %c0_i32_0 = arith.constant 0 : i32
    return %arg0, %c0_i32 : i32, i32
  }
}

</mosaic_0001>

<bundles_post_ra>
// kernel: tpu_custom_call.1
= control target key start
LH: loop header
LB: loop body
LE: loop exit
PB: predicated region body
PF: predicated region fallthrough
CT: control target
= control target key end

     0   :  { %7 = vsyncpa [#allocation4], 0  ;;  %s151_s0 = inlined_call_operand.hbm [shape: f32[3], index: 0, kind: input, shape index: {}]   ;;  %s152_s1 = inlined_call_operand.vmem [shape: f32[2,1,128], index: 1, kind: input, shape index: {}]   ;;  %s153_s2 = inlined_call_operand.hbm [shape: f32[1,128], index: 2, kind: output, shape index: {}]  }
   0x1   :  { %8 = vsyncpa [#allocation3], 0  ;;  %s68_s11 = scalar_lea.hbm %s151_s0, 16 }
   0x2   :  { %p69_p0 = scmp.ne.s32.totalorder %s151_s0, %s68_s11  ;;  %p72_p1 = scmp.lt.u32.totalorder %s68_s11, %s151_s0 }
   0x4   :  { %p74_p2 = pnand %p72_p1, %p69_p0 }
   0x6   :  { %77 = shalt.err (!%p74_p2)
}
   0x7   :  { %s104_s16 = smov [#allocation2]  }
   0x8   :  { %16 = dma.hbm_to_smem %s151_s0, 16, %s104_s16, [#allocation4]  }
   0x9   :  { %100 = dma.done.wait [#allocation4], 16  }
   0xa   :  { %101 = vsyncadd [#allocation4], 4294967280 }
   0xb   :  { %22 = sfence }
   0xc   :  { %s23_s19 = sld [smem:[#allocation2]]  ;;  %s58_s20 = sld [smem:[#allocation2 + $0x1]]  ;;  %v26_v0 = vld [vmem:[%s152_s1] sm:$0x1]  ;;  %v60_v1 = vld [vmem:[%s152_s1 + $0x1] sm:$0x1] }
   0xd   :  { %s59_s21 = sld [smem:[#allocation2 + $0x2]]  ;;  %s105_s0 = smov [#allocation5]  }
   0xe   :  { %s49_s26 = sshll.u32 %s105_s0, 4  ;;  %s50_s26 = int_to_ptr.vmem [resolvable:$true] %s49_s26 }
   0xf   :  { %s78_s27 = scalar_lea.vmem %s50_s26, 16  ;;  %s82_s1 = scalar_lea.vmem %s50_s26, 32 }
  0x10   :  { %p79_p3 = scmp.ne.s32.totalorder %s50_s26, %s78_s27  ;;  %p83_p4 = scmp.lt.s32.totalorder %s50_s26, %s50_s26 }
  0x11   :  { %p84_p5 = scmp.lt.s32.totalorder %s82_s1, %s78_s27 }
  0x12   :  { %v27_v2 = vstv %s23_s19  ;;  %v31_v3 = vstv %s58_s20 }
  0x13   :  { %v28_v4 = vmul.f32 %v27_v2, %v26_v0  ;;  %v32_v5 = vmul.f32 %v60_v1, %v31_v3  ;;  %v34_v6 = vstv %s59_s21  ;;  %p85_p6 = por %p84_p5, %p83_p4 }
  0x15   :  { %v33_v7 = vadd.f32 %v32_v5, %v28_v4  ;;  %p86_p7 = pnand %p85_p6, %p79_p3 }
  0x17   :  { %v35_v8 = vadd.f32 %v34_v6, %v33_v7 }
  0x19   :  { %v61_v9 = vmul.f32 -1.442695, %v35_v8 }
  0x1b   :  { %64 = vpow2.f32 %v61_v9 }
  0x25   :  { %v65_v10 = vpop.eup %64 }
  0x26   :  { %v39_v11 = vadd.f32 1.0, %v65_v10 }
  0x28   :  { %66 = vrcp.f32 %v39_v11 }
  0x32   :  { %v67_v12 = vpop.eup %66 }
  0x33   :  { %42 = vst [vmem:[#allocation5] sm:$0x1] %v67_v12 }
  0x34   :  { %89 = shalt.err (!%p86_p7)
}
  0x35   :  { %s90_s30 = scalar_lea.hbm %s153_s2, 16 }
  0x36   :  { %p91_p8 = scmp.ne.s32.totalorder %s153_s2, %s90_s30  ;;  %p94_p9 = scmp.lt.u32.totalorder %s90_s30, %s153_s2 }
  0x38   :  { %p96_p10 = pnand %p94_p9, %p91_p8 }
  0x3a   :  { %99 = shalt.err (!%p96_p10)
}
  0x3b   :  { %52 = dma.vmem_to_hbm [thread:$0]  %s50_s26, 16, %s153_s2, [#allocation3]  }
  0x3c   :  { %102 = dma.done.wait [#allocation3], 16  }
  0x3d   :  { %103 = vsyncadd [#allocation3], 4294967280 }
  0x3e   :  { %56 = vsyncpa [#allocation3], 1 }
  0x3f   :  { %57 = vsyncpa [#allocation4], 1 }

</bundles_post_ra>
